<compile_context>
chip_gen: v7x
topology: tpu7x:2x2x1
jax: 0.10.0
libtpu: 0.0.40
codegen_flags: <defaults>
</compile_context>

<pallas_src>
import functools

import numpy as np
import jax
import jax.numpy as jnp
from jax import lax
from jax.experimental import pallas as pl
from jax.experimental.pallas import tpu as pltpu


def _sim_bce_tile_kernel(i_tbl_ref, j_tbl_ref, w_tbl_ref, nv_ref,   # scalar prefetch (SMEM)
                         xr_ref, xc_ref, rlab_ref, clab_ref,        # tiled inputs (VMEM)
                         out_ref,                                    # (8, tile) per-core acc
                         *, tile, assume_binary_labels):
    """One upper-triangle (tile x tile) block of BCE((cos_sim+1)/2, l_i*l_j)."""
    c = pl.program_id(0)   # core chunk index     ("parallel")
    t = pl.program_id(1)   # position in the chunk's triangle-tile list ("arbitrary")

    # The per-core accumulator block is indexed only by c, so it stays resident
    # in VMEM for the entire t sweep of this core.
    @pl.when(t == 0)
    def _():
        out_ref[...] = jnp.zeros_like(out_ref)

    w = w_tbl_ref[c, t]    # 1 = diagonal tile, 2 = strictly-upper tile, 0 = padding entry

    @pl.when(w > 0)
    def _():
        ti = i_tbl_ref[c, t]
        tj = j_tbl_ref[c, t]
        n_valid = nv_ref[0]

        xr = xr_ref[...]                                  # (tile, D) pre-normalized rows
        xc = xc_ref[...]                                  # (tile, D) pre-normalized cols

        # Cosine-similarity tile: contract last dims directly on the MXU.
        sim = lax.dot_general(xr, xc, (((1,), (1,)), ((), ())),
                              preferred_element_type=jnp.float32)
        p = jnp.clip((sim + 1.0) * 0.5, 0.0, 1.0)         # (tile, tile) in [0, 1]

        # Label outer product via (tile,1) * (1,tile) broadcast — no transposes.
        y = rlab_ref[...] * clab_ref[...]                 # (tile, tile)

        if assume_binary_labels:
            # y in {0,1}: one EUP log per element instead of two.
            q = jnp.where(y > 0.5, p, 1.0 - p)
            bce = -jnp.maximum(jnp.log(q), -100.0)
        else:
            # General (soft-target) BCE; PyTorch clamps the log terms at -100.
            log_p = jnp.maximum(jnp.log(p), -100.0)
            log_1mp = jnp.maximum(jnp.log(1.0 - p), -100.0)
            bce = -(y * log_p + (1.0 - y) * log_1mp)

        # Mask padded rows/cols (N was padded up to a tile multiple).
        row_ids = ti * tile + lax.broadcasted_iota(jnp.int32, (tile, 1), 0)
        col_ids = tj * tile + lax.broadcasted_iota(jnp.int32, (1, tile), 1)
        valid = jnp.logical_and(row_ids < n_valid, col_ids < n_valid)
        bce = jnp.where(valid, bce, 0.0)

        # Fold (tile, tile) -> (8, tile) with layout-preserving VPU adds; scale by
        # the tile weight (strictly-upper tiles stand in for their skipped mirror).
        partial = jnp.sum(bce.reshape(tile // 8, 8, tile), axis=0)
        out_ref[...] += w.astype(jnp.float32) * partial


@functools.partial(jax.jit,
                   static_argnames=("tile", "assume_binary_labels", "num_cores"))
def custom_similarity_loss(embeddings, t_labels, *, tile=None,
                           assume_binary_labels=False, num_cores=2):
    """JAX/Pallas equivalent of customSimilarityLoss.forward (mean-reduced BCE).

    Set assume_binary_labels=True only when t_labels are hard {0,1} labels
    (halves the per-element EUP log work); default is the general soft-target BCE.
    """
    n, d = embeddings.shape

    # Adaptive tile: multiple of 128 (lane-dense label / output blocks), capped
    # at 256 — avoids wasting EUP work on padding for small/medium batches.
    if tile is None:
        tile = min(256, pl.cdiv(n, 128) * 128)

    x = embeddings.astype(jnp.float32)
    # Normalize once wrapper-side (O(N*D)); norm floored at 1e-8 like PyTorch's
    # cosine_similarity eps (only matters for near-zero rows).
    xn = x * lax.rsqrt(jnp.maximum(jnp.sum(x * x, axis=-1, keepdims=True), 1e-16))
    lab = t_labels.astype(jnp.float32).reshape(n)

    # Pad N up to a tile multiple; padded entries are masked inside the kernel.
    n_pad = pl.cdiv(n, tile) * tile
    if n_pad != n:
        xn = jnp.pad(xn, ((0, n_pad - n), (0, 0)))
        lab = jnp.pad(lab, (0, n_pad - n))

    lab_col = lab.reshape(n_pad, 1)   # row labels  (N_pad, 1)
    lab_row = lab.reshape(1, n_pad)   # col labels  (1, N_pad) — lane-dense

    g = n_pad // tile

    # Upper-triangle tile list (i non-decreasing), split into `num_cores`
    # contiguous count-balanced chunks; padding entries carry weight 0.
    tri = [(i, j, 1 if i == j else 2) for i in range(g) for j in range(i, g)]
    n_tri = len(tri)
    chunk = max(1, pl.cdiv(n_tri, num_cores))
    i_tbl = np.zeros((num_cores, chunk), np.int32)
    j_tbl = np.zeros((num_cores, chunk), np.int32)
    w_tbl = np.zeros((num_cores, chunk), np.int32)
    for idx, (ti, tj, w) in enumerate(tri):
        c, t = divmod(idx, chunk)
        i_tbl[c, t] = ti
        j_tbl[c, t] = tj
        w_tbl[c, t] = w

    n_arr = jnp.asarray([n], jnp.int32)

    kernel = functools.partial(_sim_bce_tile_kernel, tile=tile,
                               assume_binary_labels=assume_binary_labels)

    partials = pl.pallas_call(
        kernel,
        out_shape=jax.ShapeDtypeStruct((num_cores * 8, tile), jnp.float32),
        grid_spec=pltpu.PrefetchScalarGridSpec(
            num_scalar_prefetch=4,
            grid=(num_cores, chunk),
            in_specs=[
                # row block of xn
                pl.BlockSpec((tile, d), lambda c, t, it, jt, wt, nv: (it[c, t], 0)),
                # col block of xn
                pl.BlockSpec((tile, d), lambda c, t, it, jt, wt, nv: (jt[c, t], 0)),
                # row labels (tile, 1)
                pl.BlockSpec((tile, 1), lambda c, t, it, jt, wt, nv: (it[c, t], 0)),
                # col labels (1, tile), lane-dense
                pl.BlockSpec((1, tile), lambda c, t, it, jt, wt, nv: (0, jt[c, t])),
            ],
            # One resident (8, tile) accumulator block per core.
            out_specs=pl.BlockSpec((8, tile), lambda c, t, it, jt, wt, nv: (c, 0)),
        ),
        compiler_params=pltpu.CompilerParams(
            dimension_semantics=("parallel", "arbitrary"),
        ),
    )(jnp.asarray(i_tbl), jnp.asarray(j_tbl), jnp.asarray(w_tbl), n_arr,
      xn, xn, lab_col, lab_row)

    # Final tiny reduction + mean in JAX.
    return jnp.sum(partials) / jnp.float32(n * n)


def _reference_loss(embeddings, t_labels):
    """Plain-JAX reference (general soft-target BCE) for a correctness check."""
    x = embeddings.astype(jnp.float32)
    xn = x * lax.rsqrt(jnp.maximum(jnp.sum(x * x, -1, keepdims=True), 1e-16))
    sim = xn @ xn.T
    p = jnp.clip((sim + 1.0) * 0.5, 0.0, 1.0)
    lab = t_labels.astype(jnp.float32)
    y = lab[:, None] * lab[None, :]
    log_p = jnp.maximum(jnp.log(p), -100.0)
    log_1mp = jnp.maximum(jnp.log(1.0 - p), -100.0)
    return jnp.mean(-(y * log_p + (1.0 - y) * log_1mp))


if __name__ == "__main__":
    key = jax.random.PRNGKey(0)
    k_emb, k_lab = jax.random.split(key)

    N, D = 8, 32  # seq=8 samples, hidden=32 embedding dim
    embeddings = jax.random.normal(k_emb, (N, D), dtype=jnp.float32)
    t_labels = jax.random.bernoulli(k_lab, p=0.5, shape=(N,)).astype(jnp.float32)

    ref = _reference_loss(embeddings, t_labels)

    # General (soft-target-safe) path — the default.
    loss_general = jax.block_until_ready(
        custom_similarity_loss(embeddings, t_labels, assume_binary_labels=False))
    # Binary fast path (labels here are {0,1}); mathematically identical result.
    loss_binary = jax.block_until_ready(
        custom_similarity_loss(embeddings, t_labels, assume_binary_labels=True))

    assert jnp.allclose(loss_general, ref, rtol=1e-5, atol=1e-5), (loss_general, ref)
    assert jnp.allclose(loss_binary, ref, rtol=1e-5, atol=1e-5), (loss_binary, ref)

    print("KERNEL_OK")
</pallas_src>

<mosaic_0001>
module attributes {stable_mosaic.version = 11 : i64} {
  func.func @_sim_bce_tile_kernel(%arg0: i32, %arg1: i32, %arg2: memref<2x1xi32, #tpu.memory_space<smem>>, %arg3: memref<2x1xi32, #tpu.memory_space<smem>>, %arg4: memref<2x1xi32, #tpu.memory_space<smem>>, %arg5: memref<1xi32, #tpu.memory_space<smem>>, %arg6: memref<128x32xf32, #tpu.memory_space<vmem>>, %arg7: memref<128x32xf32, #tpu.memory_space<vmem>>, %arg8: memref<128x1xf32, #tpu.memory_space<vmem>>, %arg9: memref<1x128xf32, #tpu.memory_space<vmem>>, %arg10: memref<8x128xf32, #tpu.memory_space<vmem>>) attributes {dimension_semantics = [#tpu.dimension_semantics<parallel>, #tpu.dimension_semantics<arbitrary>], iteration_bounds = array<i64: 2, 1>, scalar_prefetch = 4 : i64, scratch_operands = 0 : i64, tpu.core_type = #tpu.core_type<tc>, window_params = [{transform_indices = @transform_0, window_bounds = array<i64: 128, 32>}, {transform_indices = @transform_1, window_bounds = array<i64: 128, 32>}, {transform_indices = @transform_2, window_bounds = array<i64: 128, 1>}, {transform_indices = @transform_3, window_bounds = array<i64: 1, 128>}, {transform_indices = @transform_4, window_bounds = array<i64: 8, 128>}]} {
    %c0_i32 = arith.constant 0 : i32
    %0 = arith.cmpi eq, %arg1, %c0_i32 : i32
    %1 = arith.extui %0 : i1 to i32
    %c0_i32_0 = arith.constant 0 : i32
    %2 = arith.cmpi ne, %1, %c0_i32_0 : i32
    scf.if %2 {
      %cst = arith.constant 0.000000e+00 : f32
      %9 = vector.broadcast %cst : f32 to vector<8x128xf32>
      %c0 = arith.constant 0 : index
      %c0_3 = arith.constant 0 : index
      %10 = vector.load %arg10[%c0, %c0_3] : memref<8x128xf32, #tpu.memory_space<vmem>>, vector<8x128xf32>
      tpu.vector_store %arg10[%c0, %c0_3], %9 {strides = array<i32>} : memref<8x128xf32, #tpu.memory_space<vmem>>, vector<8x128xf32>,
    } else {
    }
    %3 = arith.index_cast %arg0 : i32 to index
    %4 = arith.index_cast %arg1 : i32 to index
    %5 = memref.load %arg4[%3, %4] : memref<2x1xi32, #tpu.memory_space<smem>>
    %c0_i32_1 = arith.constant 0 : i32
    %6 = arith.cmpi sgt, %5, %c0_i32_1 : i32
    %7 = arith.extui %6 : i1 to i32
    %c0_i32_2 = arith.constant 0 : i32
    %8 = arith.cmpi ne, %7, %c0_i32_2 : i32
    scf.if %8 {
      %9 = arith.index_cast %arg0 : i32 to index
      %10 = arith.index_cast %arg1 : i32 to index
      %11 = memref.load %arg2[%9, %10] : memref<2x1xi32, #tpu.memory_space<smem>>
      %12 = arith.index_cast %arg0 : i32 to index
      %13 = arith.index_cast %arg1 : i32 to index
      %14 = memref.load %arg3[%12, %13] : memref<2x1xi32, #tpu.memory_space<smem>>
      %c0 = arith.constant 0 : index
      %15 = memref.load %arg5[%c0] : memref<1xi32, #tpu.memory_space<smem>>
      %c0_3 = arith.constant 0 : index
      %c0_4 = arith.constant 0 : index
      %16 = vector.load %arg6[%c0_3, %c0_4] : memref<128x32xf32, #tpu.memory_space<vmem>>, vector<128x32xf32>
      %c0_5 = arith.constant 0 : index
      %c0_6 = arith.constant 0 : index
      %17 = vector.load %arg7[%c0_5, %c0_6] : memref<128x32xf32, #tpu.memory_space<vmem>>, vector<128x32xf32>
      %cst = arith.constant dense<0.000000e+00> : vector<128x128xf32>
      %18 = tpu.matmul %16, %17, %cst {dimension_numbers = #tpu.dot_dimension_numbers<[1], [1], [0], [0], [0, 0, 1, 0], [], []>} : vector<128x32xf32>, vector<128x32xf32>, vector<128x128xf32> -> vector<128x128xf32>
      %cst_7 = arith.constant 1.000000e+00 : f32
      %19 = vector.broadcast %cst_7 : f32 to vector<128x128xf32>
      %20 = arith.addf %18, %19 : vector<128x128xf32>
      %cst_8 = arith.constant 5.000000e-01 : f32
      %21 = vector.broadcast %cst_8 : f32 to vector<128x128xf32>
      %22 = arith.mulf %20, %21 : vector<128x128xf32>
      %cst_9 = arith.constant 0.000000e+00 : f32
      %cst_10 = arith.constant 1.000000e+00 : f32
      %23 = vector.broadcast %cst_9 : f32 to vector<128x128xf32>
      %24 = arith.maximumf %23, %22 : vector<128x128xf32>
      %25 = vector.broadcast %cst_10 : f32 to vector<128x128xf32>
      %26 = arith.minimumf %25, %24 : vector<128x128xf32>
      %c0_11 = arith.constant 0 : index
      %c0_12 = arith.constant 0 : index
      %27 = vector.load %arg8[%c0_11, %c0_12] : memref<128x1xf32, #tpu.memory_space<vmem>>, vector<128x1xf32>
      %c0_13 = arith.constant 0 : index
      %c0_14 = arith.constant 0 : index
      %28 = vector.load %arg9[%c0_13, %c0_14] : memref<1x128xf32, #tpu.memory_space<vmem>>, vector<1x128xf32>
      %29 = vector.broadcast %27 : vector<128x1xf32> to vector<128x128xf32>
      %30 = vector.broadcast %28 : vector<1x128xf32> to vector<128x128xf32>
      %31 = arith.mulf %29, %30 : vector<128x128xf32>
      %32 = math.log %26 : vector<128x128xf32>
      %cst_15 = arith.constant -1.000000e+02 : f32
      %33 = vector.broadcast %cst_15 : f32 to vector<128x128xf32>
      %34 = arith.maximumf %32, %33 : vector<128x128xf32>
      %cst_16 = arith.constant 1.000000e+00 : f32
      %35 = vector.broadcast %cst_16 : f32 to vector<128x128xf32>
      %36 = arith.subf %35, %26 : vector<128x128xf32>
      %37 = math.log %36 : vector<128x128xf32>
      %cst_17 = arith.constant -1.000000e+02 : f32
      %38 = vector.broadcast %cst_17 : f32 to vector<128x128xf32>
      %39 = arith.maximumf %37, %38 : vector<128x128xf32>
      %40 = arith.mulf %31, %34 : vector<128x128xf32>
      %cst_18 = arith.constant 1.000000e+00 : f32
      %41 = vector.broadcast %cst_18 : f32 to vector<128x128xf32>
      %42 = arith.subf %41, %31 : vector<128x128xf32>
      %43 = arith.mulf %42, %39 : vector<128x128xf32>
      %44 = arith.addf %40, %43 : vector<128x128xf32>
      %cst_19 = arith.constant 0.000000e+00 : f32
      %45 = vector.broadcast %cst_19 : f32 to vector<128x128xf32>
      %46 = arith.subf %45, %44 : vector<128x128xf32>
      %c128_i32 = arith.constant 128 : i32
      %47 = arith.muli %11, %c128_i32 : i32
      %48 = tpu.iota {dimensions = array<i32: 0>} : vector<128x1xi32>
      %49 = vector.broadcast %47 : i32 to vector<128x1xi32>
      %50 = arith.addi %49, %48 : vector<128x1xi32>
      %c128_i32_20 = arith.constant 128 : i32
      %51 = arith.muli %14, %c128_i32_20 : i32
      %52 = tpu.iota {dimensions = array<i32: 1>} : vector<1x128xi32>
      %53 = vector.broadcast %51 : i32 to vector<1x128xi32>
      %54 = arith.addi %53, %52 : vector<1x128xi32>
      %55 = vector.broadcast %15 : i32 to vector<128x1xi32>
      %56 = arith.cmpi slt, %50, %55 : vector<128x1xi32>
      %57 = vector.broadcast %15 : i32 to vector<1x128xi32>
      %58 = arith.cmpi slt, %54, %57 : vector<1x128xi32>
      %59 = vector.broadcast %56 : vector<128x1xi1> to vector<128x128xi1>
      %60 = vector.broadcast %58 : vector<1x128xi1> to vector<128x128xi1>
      %61 = arith.andi %59, %60 : vector<128x128xi1>
      %cst_21 = arith.constant 0.000000e+00 : f32
      %62 = vector.broadcast %cst_21 : f32 to vector<128x128xf32>
      %63 = arith.select %61, %46, %62 : vector<128x128xi1>, vector<128x128xf32>
      %64 = vector.shape_cast %63 : vector<128x128xf32> to vector<16x8x128xf32>
      %cst_22 = arith.constant dense<0.000000e+00> : vector<8x128xf32>
      %65 = vector.multi_reduction <add>, %64, %cst_22 [0] : vector<16x8x128xf32> to vector<8x128xf32>
      %c0_23 = arith.constant 0 : index
      %c0_24 = arith.constant 0 : index
      %66 = vector.load %arg10[%c0_23, %c0_24] : memref<8x128xf32, #tpu.memory_space<vmem>>, vector<8x128xf32>
      %67 = arith.sitofp %5 : i32 to f32
      %68 = vector.broadcast %67 : f32 to vector<8x128xf32>
      %69 = arith.mulf %68, %65 : vector<8x128xf32>
      %70 = arith.addf %66, %69 : vector<8x128xf32>
      %c0_25 = arith.constant 0 : index
      %c0_26 = arith.constant 0 : index
      %71 = vector.load %arg10[%c0_25, %c0_26] : memref<8x128xf32, #tpu.memory_space<vmem>>, vector<8x128xf32>
      tpu.vector_store %arg10[%c0_25, %c0_26], %70 {strides = array<i32>} : memref<8x128xf32, #tpu.memory_space<vmem>>, vector<8x128xf32>,
    } else {
    }
    return
  }
  func.func @transform_0(%arg0: i32, %arg1: i32, %arg2: memref<2x1xi32, #tpu.memory_space<smem>>, %arg3: memref<2x1xi32, #tpu.memory_space<smem>>, %arg4: memref<2x1xi32, #tpu.memory_space<smem>>, %arg5: memref<1xi32, #tpu.memory_space<smem>>) -> (i32, i32) {
    %0 = arith.index_cast %arg0 : i32 to index
    %1 = arith.index_cast %arg1 : i32 to index
    %2 = memref.load %arg2[%0, %1] : memref<2x1xi32, #tpu.memory_space<smem>>
    %c0_i32 = arith.constant 0 : i32
    %c0_i32_0 = arith.constant 0 : i32
    return %2, %c0_i32 : i32, i32
  }
  func.func @transform_1(%arg0: i32, %arg1: i32, %arg2: memref<2x1xi32, #tpu.memory_space<smem>>, %arg3: memref<2x1xi32, #tpu.memory_space<smem>>, %arg4: memref<2x1xi32, #tpu.memory_space<smem>>, %arg5: memref<1xi32, #tpu.memory_space<smem>>) -> (i32, i32) {
    %0 = arith.index_cast %arg0 : i32 to index
    %1 = arith.index_cast %arg1 : i32 to index
    %2 = memref.load %arg3[%0, %1] : memref<2x1xi32, #tpu.memory_space<smem>>
    %c0_i32 = arith.constant 0 : i32
    %c0_i32_0 = arith.constant 0 : i32
    return %2, %c0_i32 : i32, i32
  }
  func.func @transform_2(%arg0: i32, %arg1: i32, %arg2: memref<2x1xi32, #tpu.memory_space<smem>>, %arg3: memref<2x1xi32, #tpu.memory_space<smem>>, %arg4: memref<2x1xi32, #tpu.memory_space<smem>>, %arg5: memref<1xi32, #tpu.memory_space<smem>>) -> (i32, i32) {
    %0 = arith.index_cast %arg0 : i32 to index
    %1 = arith.index_cast %arg1 : i32 to index
    %2 = memref.load %arg2[%0, %1] : memref<2x1xi32, #tpu.memory_space<smem>>
    %c0_i32 = arith.constant 0 : i32
    %c0_i32_0 = arith.constant 0 : i32
    return %2, %c0_i32 : i32, i32
  }
  func.func @transform_3(%arg0: i32, %arg1: i32, %arg2: memref<2x1xi32, #tpu.memory_space<smem>>, %arg3: memref<2x1xi32, #tpu.memory_space<smem>>, %arg4: memref<2x1xi32, #tpu.memory_space<smem>>, %arg5: memref<1xi32, #tpu.memory_space<smem>>) -> (i32, i32) {
    %0 = arith.index_cast %arg0 : i32 to index
    %1 = arith.index_cast %arg1 : i32 to index
    %2 = memref.load %arg3[%0, %1] : memref<2x1xi32, #tpu.memory_space<smem>>
    %c0_i32 = arith.constant 0 : i32
    %c0_i32_0 = arith.constant 0 : i32
    return %c0_i32, %2 : i32, i32
  }
  func.func @transform_4(%arg0: i32, %arg1: i32, %arg2: memref<2x1xi32, #tpu.memory_space<smem>>, %arg3: memref<2x1xi32, #tpu.memory_space<smem>>, %arg4: memref<2x1xi32, #tpu.memory_space<smem>>, %arg5: memref<1xi32, #tpu.memory_space<smem>>) -> (i32, i32) {
    %c0_i32 = arith.constant 0 : i32
    %c0_i32_0 = arith.constant 0 : i32
    return %arg0, %c0_i32 : i32, i32
  }
}

</mosaic_0001>

<bundles_post_ra>
// kernel: custom_similarity_loss.1
= control target key start
LH: loop header
LB: loop body
LE: loop exit
PB: predicated region body
PF: predicated region fallthrough
CT: control target
= control target key end

     0   :  { %s2402_s0 = inlined_call_operand.vmem [shape: s32[2,1], index: 0, kind: input, shape index: {}, may-alias: {0,1}]   ;;  %s2403_s4 = inlined_call_operand.vmem [shape: f32[128,32], index: 4, kind: input, shape index: {}, may-alias: {4,5}]   ;;  %s2404_s5 = inlined_call_operand.vmem [shape: f32[128,32], index: 5, kind: input, shape index: {}, may-alias: {4,5}]   ;;  %s2405_s6 = inlined_call_operand.vmem [shape: f32[128,1], index: 6, kind: input, shape index: {}]   ;;  %s2406_s7 = inlined_call_operand.vmem [shape: f32[1,128], index: 7, kind: input, shape index: {}]   ;;  %s2407_s8 = inlined_call_operand.vmem [shape: f32[16,128], index: 8, kind: output, shape index: {}]   ;;  %s2408_s1 = inlined_call_operand.vmem [shape: s32[2,1], index: 1, kind: input, shape index: {}, may-alias: {0,1}]   ;;  %s2409_s2 = inlined_call_operand.vmem [shape: s32[2,1], index: 2, kind: input, shape index: {}]   ;;  %s2410_s3 = inlined_call_operand.<no memory space> [shape: s32[1], index: 3, kind: input, shape index: {}]  }
   0x1   :  { %s13_s29 = sshll.u32 %s2402_s0, 4  ;;  %s17_s10 = sshll.u32 %s2408_s1, 4  ;;  %s14_s29 = int_to_ptr.vmem [resolvable:$true] %s13_s29  ;;  %s18_s10 = int_to_ptr.vmem [resolvable:$true] %s17_s10 }
   0x2   :  { %s1713_s11 = scalar_lea.vmem %s14_s29, 32  ;;  %p1718_p1 = scmp.lt.s32.totalorder %s14_s29, %s14_s29 }
   0x3   :  { %p1714_p0 = scmp.ne.s32.totalorder %s14_s29, %s1713_s11  ;;  %p1719_p2 = scmp.lt.s32.totalorder %s1713_s11, %s1713_s11 }
   0x5   :  { %p1720_p3 = por %p1719_p2, %p1718_p1 }
   0x7   :  { %p1721_p4 = pnand %p1720_p3, %p1714_p0 }
   0x9   :  { %1724 = shalt.err (!%p1721_p4)  }
   0xa   :  { %s1775_s12 = smov [#allocation3]   ;;  %s1725_s13 = scalar_lea.vmem %s18_s10, 32 }
   0xb   :  { %16 = dma.vmem_to_smem %s14_s29, 32, %s1775_s12, [#allocation2] }
   0xc   :  { %p1726_p5 = scmp.ne.s32.totalorder %s18_s10, %s1725_s13  ;;  %p1730_p6 = scmp.lt.s32.totalorder %s18_s10, %s18_s10 }
   0xd   :  { %p1731_p7 = scmp.lt.s32.totalorder %s1725_s13, %s1725_s13 }
   0xf   :  { %p1732_p8 = por %p1731_p7, %p1730_p6 }
  0x11   :  { %p1733_p9 = pnand %p1732_p8, %p1726_p5 }
  0x13   :  { %1736 = shalt.err (!%p1733_p9)  }
  0x14   :  { %s1776_s0 = smov [#allocation4]   ;;  %s21_s15 = sshll.u32 %s2409_s2, 4  ;;  %s22_s15 = int_to_ptr.vmem [resolvable:$true] %s21_s15 }
  0x15   :  { %20 = dma.vmem_to_smem %s18_s10, 32, %s1776_s0, [#allocation2] }
  0x16   :  { %25 = sst [smem:[#allocation6]] %s2410_s3  ;;  %s1737_s18 = scalar_lea.vmem %s22_s15, 32 }
  0x17   :  { %p1738_p10 = scmp.ne.s32.totalorder %s22_s15, %s1737_s18  ;;  %p1742_p11 = scmp.lt.s32.totalorder %s22_s15, %s22_s15 }
  0x18   :  { %p1743_p12 = scmp.lt.s32.totalorder %s1737_s18, %s1737_s18 }
  0x1a   :  { %p1744_p13 = por %p1743_p12, %p1742_p11 }
  0x1c   :  { %p1745_p0 = pnand %p1744_p13, %p1738_p10 }
  0x1e   :  { %1748 = shalt.err (!%p1745_p0)  }
  0x1f   :  { %s1777_s19 = smov [#allocation5]  }
  0x20   :  { %24 = dma.vmem_to_smem %s22_s15, 32, %s1777_s19, [#allocation2] }
  0x21   :  { %1761 = dma.done.wait [#allocation2], 96 }
  0x22   :  { %1762 = vsyncadd [#allocation2], 4294967200 }
  0x23   :  { %27 = sfence }
  0x24   :  { %s1837_s20 = smov 0   ;;  %s1839_s2 = smov 0  }
  0x25   :  { %s1841_s21 = smov 0  }
  0x26 LB: > { %s45_s3 = sadd.s32 1, %s1769_s2  ;;  %p1415_p1 = scmp.ge.s32.totalorder %s1773_s21, 1  ;;  %s1773_s21 = sphi %s1841_s21, %s33_s21   ;;  %s1769_s2 = sphi %s1839_s2, %s2422_s2   ;;  %s1765_s20 = sphi %s1837_s20, %s2421_s20  }
  0x27   : > { %p47_p2 = scmp.ge.s32.totalorder %s45_s3, 2  ;;  %p352_p3 = scmp.lt.s32.totalorder %s1773_s21, 3 }
  0x29   : > { %s2424_s3 = smov (%p47_p2, %s45_s3), 0  ;;  %p353_p4 = pnand %p1415_p1, %p352_p3 }
  0x2a   : > { %s1855_s22 = sshll.u32 (!%p353_p4), %s1765_s20, 7  ;;  %p507_p5 = scmp.lt.s32.totalorder (!%p353_p4), %s1765_s20, 1  ;;  %v1778_v0 = vmov (!%p353_p4), 0.0  }
  0x2b   : > { %356 = sbr.rel (%p353_p4) target bundleno = 438 (0x1b6), region = 36  ;;  %s429_s23 = sld [smem:[#allocation3 + %s1855_s22]] (!%p353_p4) }
  0x2c   : > { %s451_s24 = sld [smem:[#allocation4 + %s1855_s22]] (!%p353_p4) }
  0x2d   : > { %s473_s25 = sld [smem:[#allocation3 + %s1855_s22]] (!%p353_p4) }
  0x2e   : > { %s495_s26 = sld [smem:[#allocation4 + %s1855_s22]] (!%p353_p4) }
  0x2f   : > { %s1862_s27 = sld [smem:[#allocation5 + %s1855_s22]] (!%p353_p4) }
  0x31   : > { %s1417_s10 = sshll.u32 (!%p353_p4), %s429_s23, 4 }
  0x32   : > { %s2426_s20 = smov (!%p507_p5, %s1765_s20), 1  ;;  %s1420_s11 = sshll.u32 %s451_s24, 4 }
  0x33   : > { %s1426_s28 = sshll.u32 %s2426_s20, 3  ;;  %p431_p6 = scmp.lt.s32.totalorder %s1417_s10, 15 }
  0x34   : > { %s1867_s9 = scalar_lea.vmem %s2407_s8, %s1426_s28  ;;  %p453_p7 = scmp.lt.s32.totalorder %s1420_s11, 15 }
  0x35   : > { %515 = vst [vmem:[%s1867_s9] sm:$0xff] %v1778_v0  ;;  %s1423_s12 = sshll.u32 %s473_s25, 4  ;;  %p496_p8 = scmp.lt.s32.totalorder %s495_s26, 0 }
  0x36   : > { %s2428_s10 = smov (!%p431_p6, %s1417_s10), 15  ;;  %s2430_s11 = smov (!%p453_p7, %s1420_s11), 15 }
  0x37   : > { %s1418_s13 = sshll.u32 %s2428_s10, 3  ;;  %p475_p9 = scmp.lt.s32.totalorder %s1423_s12, 15 }
  0x38   : > { %s1873_s14 = scalar_lea.vmem %s2403_s4, %s1418_s13  ;;  %s1421_s15 = sshll.u32 %s2430_s11, 3 }
  0x39   : > { %s1878_s18 = scalar_lea.vmem %s2404_s5, %s1421_s15  ;;  %s2432_s12 = smov (!%p475_p9, %s1423_s12), 15 }
  0x3a   : > { %s2434_s26 = smov (!%p496_p8, %s495_s26), 0  ;;  %s1424_s19 = sshll.u32 %s2432_s12, 3 }
  0x3b   : > { %s1885_s24 = scalar_lea.vmem %s2405_s6, %s1424_s19  ;;  %s498_s29 = scalar_lea.vmem %s2406_s7, %s2434_s26 }
  0x3c   : > { %p1428_p10 = scmp.le.s32.totalorder %s1862_s27, 0 }
  0x3d   : > { %v547_v1 = vld [vmem:[%s1878_s18] sm:$0xff] (!%p1428_p10)  ;;  %v548_v2 = vld [vmem:[%s1878_s18 + $0x8] sm:$0xff] (!%p1428_p10)  ;;  %vm563_vm0 = vcmask (!%p1428_p10), 261120   ;;  %v549_v3 = vld [vmem:[%s1878_s18 + $0x10] sm:$0xff] (!%p1428_p10)  ;;  %v1779_v7 = vmov (!%p1428_p10), 0   ;;  %s2034_s11 = sld [smem:[#allocation3 + %s1855_s22]] (!%p1428_p10)  ;;  %s1304_s0 = scvt.s32.f32 (!%p1428_p10), %s1862_s27 }
  0x3e   : > { %527 = sbr.rel (%p1428_p10) target bundleno = 438 (0x1b6), region = 44  ;;  %v1554_v4 = vpack.c.bf16 (!%p1428_p10), %v548_v2, %v547_v1  ;;  %vm1897_vm1 = vmpackc.low (!%p1428_p10), %vm563_vm0, %vm563_vm0  ;;  %v550_v6 = vld [vmem:[%s1878_s18 + $0x18] sm:$0xff] (!%p1428_p10)  ;;  %1647 = vset.pattern.permute.xlu0 (!%p1428_p10), %v1779_v7  ;;  %1648 = vset.pattern.permute.xlu1 (!%p1428_p10), %v1779_v7  ;;  %v531_v9 = vld [vmem:[%s1873_s14] sm:$0xff] (!%p1428_p10)  ;;  %s2037_s12 = sld [smem:[#allocation4 + %s1855_s22]] (!%p1428_p10)  ;;  %v1165_v1 = vlaneseq (!%p1428_p10) }
  0x3f   : > { %v1560_v8 = vpack.c.bf16 (!%p1428_p10), %v550_v6, %v549_v3  ;;  %v551_v10 = vld [vmem:[%s1878_s18 + $0x20] sm:$0xff] (!%p1428_p10)  ;;  %v552_v11 = vld [vmem:[%s1878_s18 + $0x28] sm:$0xff] (!%p1428_p10)  ;;  %1530 = vmatprep.mubr.msk.f32.mxu0 (!%p1428_p10), %vm563_vm0, %v531_v9  ;;  %v855_v15 = vld [vmem:[%s1885_s24 + $0x10] sm:$0xff] (!%p1428_p10)  ;;  %s2053_s22 = sld [smem:[#allocation6]] (!%p1428_p10) }
  0x40   : > { %1556 = vmatprep.subr.msk.bf16.mxu0 (!%p1428_p10), %vm1897_vm1, %v1554_v4  ;;  %1602 = vmatprep.subr.msk.bf16.mxu1 (!%p1428_p10), %vm1897_vm1, %v1554_v4  ;;  %v539_v12 = vld [vmem:[%s1873_s14 + $0x40] sm:$0xff] (!%p1428_p10)  ;;  %v1566_v13 = vpack.c.bf16 (!%p1428_p10), %v552_v11, %v551_v10  ;;  %v553_v16 = vld [vmem:[%s1878_s18 + $0x30] sm:$0xff] (!%p1428_p10)  ;;  %v554_v17 = vld [vmem:[%s1878_s18 + $0x38] sm:$0xff] (!%p1428_p10)  ;;  %v2050_v11 = vshrl.u32 (!%p1428_p10), %v1165_v1, 7 }
  0x41   : > { %1559 = vmatpush3.bf16.xpose.msk.msra.mxu0 (!%p1428_p10), %vm1897_vm1, %v1554_v4  ;;  %1610 = vmatpush3.bf16.xpose.msk.msra.mxu1 (!%p1428_p10), %vm1897_vm1, %v1554_v4  ;;  %v853_v14 = vld [vmem:[%s1885_s24] sm:$0xff] (!%p1428_p10)  ;;  %v854_v18 = vld [vmem:[%s1885_s24 + $0x8] sm:$0xff] (!%p1428_p10)  ;;  %v856_v19 = vld [vmem:[%s1885_s24 + $0x18] sm:$0xff] (!%p1428_p10)  ;;  %v1572_v20 = vpack.c.bf16 (!%p1428_p10), %v554_v17, %v553_v16 }
  0x42   : > { %1562 = vmatprep.subr.msk.bf16.mxu0 (!%p1428_p10), %vm1897_vm1, %v1560_v8  ;;  %1603 = vmatprep.subr.msk.bf16.mxu1 (!%p1428_p10), %vm1897_vm1, %v1560_v8  ;;  %v857_v21 = vld [vmem:[%s1885_s24 + $0x20] sm:$0xff] (!%p1428_p10)  ;;  %v858_v22 = vld [vmem:[%s1885_s24 + $0x28] sm:$0xff] (!%p1428_p10)  ;;  %v859_v25 = vld [vmem:[%s1885_s24 + $0x30] sm:$0xff] (!%p1428_p10) }
  0x43   : > { %1542 = vmatprep.mubr.msk.f32.mxu1 (!%p1428_p10), %vm563_vm0, %v539_v12  ;;  %872 = vperm.xlu0 (!%p1428_p10), %1647, %v853_v14   ;;  %v555_v23 = vld [vmem:[%s1878_s18 + $0x40] sm:$0xff] (!%p1428_p10)  ;;  %v556_v24 = vld [vmem:[%s1878_s18 + $0x48] sm:$0xff] (!%p1428_p10)  ;;  %v860_v26 = vld [vmem:[%s1885_s24 + $0x38] sm:$0xff] (!%p1428_p10)  ;;  %s1462_s26 = sshll.u32 (!%p1428_p10), %s2034_s11, 7 }
  0x44   : > { %882 = vperm.xlu1 (!%p1428_p10), %1648, %v855_v15   ;;  %v1578_v27 = vpack.c.bf16 (!%p1428_p10), %v556_v24, %v555_v23  ;;  %v861_v28 = vld [vmem:[%s1885_s24 + $0x40] sm:$0xff] (!%p1428_p10)  ;;  %v862_v29 = vld [vmem:[%s1885_s24 + $0x48] sm:$0xff] (!%p1428_p10)  ;;  %v557_v30 = vld [vmem:[%s1878_s18 + $0x50] sm:$0xff] (!%p1428_p10)  ;;  %s1463_s13 = sshll.u32 (!%p1428_p10), %s2037_s12, 7 }
  0x45   : > { %v558_v31 = vld [vmem:[%s1878_s18 + $0x58] sm:$0xff]  ;;  %v863_v32 = vld [vmem:[%s1885_s24 + $0x50] sm:$0xff]  ;;  %v865_v35 = vld [vmem:[%s1885_s24 + $0x60] sm:$0xff] }
  0x46   : > { %v864_v33 = vld [vmem:[%s1885_s24 + $0x58] sm:$0xff]  ;;  %v1584_v34 = vpack.c.bf16 %v558_v31, %v557_v30  ;;  %v866_v36 = vld [vmem:[%s1885_s24 + $0x68] sm:$0xff]  ;;  %v559_v37 = vld [vmem:[%s1878_s18 + $0x60] sm:$0xff] }
  0x47   : > { %877 = vperm.xlu0 %1647, %v854_v18   ;;  %v560_v38 = vld [vmem:[%s1878_s18 + $0x68] sm:$0xff]  ;;  %v867_v39 = vld [vmem:[%s1885_s24 + $0x70] sm:$0xff]  ;;  %v868_v40 = vld [vmem:[%s1885_s24 + $0x78] sm:$0xff] }
  0x48   : > { %887 = vperm.xlu1 %1648, %v856_v19   ;;  %v1590_v41 = vpack.c.bf16 %v560_v38, %v559_v37  ;;  %v561_v42 = vld [vmem:[%s1878_s18 + $0x70] sm:$0xff]  ;;  %v562_v43 = vld [vmem:[%s1878_s18 + $0x78] sm:$0xff]  ;;  %v532_v45 = vld [vmem:[%s1873_s14 + $0x8] sm:$0xff] }
  0x49   : > { %1565 = vmatpush3.bf16.xpose.msk.msra.mxu0 %vm1897_vm1, %v1560_v8  ;;  %1611 = vmatpush3.bf16.xpose.msk.msra.mxu1 %vm1897_vm1, %v1560_v8  ;;  %v1596_v44 = vpack.c.bf16 %v562_v43, %v561_v42  ;;  %v540_v46 = vld [vmem:[%s1873_s14 + $0x48] sm:$0xff]  ;;  %v533_v47 = vld [vmem:[%s1873_s14 + $0x10] sm:$0xff]  ;;  %v534_v49 = vld [vmem:[%s1873_s14 + $0x18] sm:$0xff] }
  0x4a   : > { %1568 = vmatprep.subr.msk.bf16.mxu0 %vm1897_vm1, %v1566_v13  ;;  %1604 = vmatprep.subr.msk.bf16.mxu1 %vm1897_vm1, %v1566_v13  ;;  %v541_v48 = vld [vmem:[%s1873_s14 + $0x50] sm:$0xff]  ;;  %v542_v50 = vld [vmem:[%s1873_s14 + $0x58] sm:$0xff]  ;;  %v535_v51 = vld [vmem:[%s1873_s14 + $0x20] sm:$0xff] }
  0x4b   : > { %892 = vperm.xlu0 %1647, %v857_v21   ;;  %v543_v52 = vld [vmem:[%s1873_s14 + $0x60] sm:$0xff]  ;;  %v536_v53 = vld [vmem:[%s1873_s14 + $0x28] sm:$0xff]  ;;  %v537_v55 = vld [vmem:[%s1873_s14 + $0x30] sm:$0xff] }
  0x4c   : > { %897 = vperm.xlu1 %1648, %v858_v22   ;;  %v544_v54 = vld [vmem:[%s1873_s14 + $0x68] sm:$0xff]  ;;  %v545_v56 = vld [vmem:[%s1873_s14 + $0x70] sm:$0xff]  ;;  %v538_v57 = vld [vmem:[%s1873_s14 + $0x38] sm:$0xff] }
  0x4d   : > { %v546_v58 = vld [vmem:[%s1873_s14 + $0x78] sm:$0xff]  ;;  %v2031_v63 = vld [vmem:[%s498_s29] ss:$0 sm:$0xff] }
  0x4f   : > { %902 = vperm.xlu0 %1647, %v859_v25  }
  0x50   : > { %907 = vperm.xlu1 %1648, %v860_v26  }
  0x51   : > { %1571 = vmatpush3.bf16.xpose.msk.msra.mxu0 %vm1897_vm1, %v1566_v13  ;;  %1612 = vmatpush3.bf16.xpose.msk.msra.mxu1 %vm1897_vm1, %v1566_v13 }
  0x52   : > { %1574 = vmatprep.subr.msk.bf16.mxu0 %vm1897_vm1, %v1572_v20  ;;  %1605 = vmatprep.subr.msk.bf16.mxu1 %vm1897_vm1, %v1572_v20 }
  0x53   : > { %912 = vperm.xlu0 %1647, %v861_v28   ;;  %v1201_v28 = vand.u32 127, %v1165_v1 }
  0x54   : > { %917 = vperm.xlu1 %1648, %v862_v29  }
  0x57   : > { %922 = vperm.xlu0 %1647, %v863_v32   ;;  %v2070_v32 = vstv %s1462_s26 }
  0x58   : > { %927 = vperm.xlu1 %1648, %v864_v33   ;;  %v1202_v33 = vstv %s1463_s13 }
  0x59   : > { %1577 = vmatpush3.bf16.xpose.msk.msra.mxu0 %vm1897_vm1, %v1572_v20  ;;  %1613 = vmatpush3.bf16.xpose.msk.msra.mxu1 %vm1897_vm1, %v1572_v20 }
  0x5a   : > { %1580 = vmatprep.subr.msk.bf16.mxu0 %vm1897_vm1, %v1578_v27  ;;  %1606 = vmatprep.subr.msk.bf16.mxu1 %vm1897_vm1, %v1578_v27 }
  0x5b   : > { %932 = vperm.xlu0 %1647, %v865_v35  }
  0x5c   : > { %937 = vperm.xlu1 %1648, %v866_v36  }
  0x5f   : > { %942 = vperm.xlu0 %1647, %v867_v39  }
  0x60   : > { %947 = vperm.xlu1 %1648, %v868_v40  }
  0x61   : > { %1583 = vmatpush3.bf16.xpose.msk.msra.mxu0 %vm1897_vm1, %v1578_v27  ;;  %1614 = vmatpush3.bf16.xpose.msk.msra.mxu1 %vm1897_vm1, %v1578_v27  ;;  %v1167_v27 = vadd.s32 8, %v2050_v11 }
  0x62   : > { %1586 = vmatprep.subr.msk.bf16.mxu0 %vm1897_vm1, %v1584_v34  ;;  %1607 = vmatprep.subr.msk.bf16.mxu1 %vm1897_vm1, %v1584_v34 }
  0x69   : > { %1589 = vmatpush3.bf16.xpose.msk.msra.mxu0 %vm1897_vm1, %v1584_v34  ;;  %1615 = vmatpush3.bf16.xpose.msk.msra.mxu1 %vm1897_vm1, %v1584_v34 }
  0x6a   : > { %1592 = vmatprep.subr.msk.bf16.mxu0 %vm1897_vm1, %v1590_v41  ;;  %1608 = vmatprep.subr.msk.bf16.mxu1 %vm1897_vm1, %v1590_v41 }
  0x71   : > { %1595 = vmatpush3.bf16.xpose.msk.msra.mxu0 %vm1897_vm1, %v1590_v41  ;;  %1616 = vmatpush3.bf16.xpose.msk.msra.mxu1 %vm1897_vm1, %v1590_v41 }
  0x72   : > { %1598 = vmatprep.subr.msk.bf16.mxu0 %vm1897_vm1, %v1596_v44  ;;  %1609 = vmatprep.subr.msk.bf16.mxu1 %vm1897_vm1, %v1596_v44 }
  0x79   : > { %1601 = vmatpush3.bf16.xpose.msk.msra.mxu0 %vm1897_vm1, %v1596_v44  ;;  %1617 = vmatpush3.bf16.xpose.msk.msra.mxu1 %vm1897_vm1, %v1596_v44 }
  0x80   : > { %1531 = vmatmul.mubr.msk.f32.vlgmr.msra.gmra.mrb[0].mxu0 %vm563_vm0, %v532_v45  ;;  %1543 = vmatmul.mubr.msk.f32.vlgmr.msra.gmra.mrb[0].mxu1 %vm563_vm0, %v540_v46 }
  0x81   : > { %1533 = vmatprep.mubr.msk.f32.mxu0 %vm563_vm0, %v533_v47  ;;  %1545 = vmatprep.mubr.msk.f32.mxu1 %vm563_vm0, %v541_v48  ;;  %v2082_v47 = vadd.s32 %v2070_v32, %v1167_v27  ;;  %v1203_v48 = vadd.s32 %v1202_v33, %v1201_v28  ;;  %v1168_v27 = vadd.s32 16, %v2050_v11  ;;  %v1174_v28 = vadd.s32 64, %v2050_v11 }
  0x84   : > { %1534 = vmatmul.mubr.msk.f32.gmra.mrb[2].mxu0 %vm563_vm0, %v534_v49  ;;  %1546 = vmatmul.mubr.msk.f32.gmra.mrb[2].mxu1 %vm563_vm0, %v542_v50 }
  0x85   : > { %1536 = vmatprep.mubr.msk.f32.mxu0 %vm563_vm0, %v535_v51  ;;  %1548 = vmatprep.mubr.msk.f32.mxu1 %vm563_vm0, %v543_v52 }
  0x88   : > { %1537 = vmatmul.mubr.msk.f32.gmra.mrb[4].mxu0 %vm563_vm0, %v536_v53  ;;  %1549 = vmatmul.mubr.msk.f32.gmra.mrb[4].mxu1 %vm563_vm0, %v544_v54 }
  0x89   : > { %1539 = vmatprep.mubr.msk.f32.mxu0 %vm563_vm0, %v537_v55  ;;  %1551 = vmatprep.mubr.msk.f32.mxu1 %vm563_vm0, %v545_v56 }
  0x8c   : > { %1540 = vmatmul.mubr.msk.f32.gmra.mrb[6].mxu0 %vm563_vm0, %v538_v57  ;;  %1552 = vmatmul.mubr.msk.f32.gmra.mrb[6].mxu1 %vm563_vm0, %v546_v58 }
  0xc2   : > { %v873_v59 = vpop.permute.xlu0 %872 }
  0xc3   : > { %v883_v61 = vpop.permute.xlu1 %882  ;;  %v2040_v2 = vmul.f32 %v2031_v63, %v873_v59 }
  0xc4   : > { %v2043_v4 = vmul.f32 %v2031_v63, %v883_v61  ;;  %v2099_v61 = vstv %s2053_s22 }
  0xc5   : > { %v1100_v13 = vsub.f32 1.0, %v2040_v2  ;;  %vm1206_vm2 = vcmp.lt.s32.totalorder %v2082_v47, %v2099_v61  ;;  %vm2125_vm3 = vcmp.lt.s32.totalorder %v1203_v48, %v2099_v61 }
  0xc6   : > { %v878_v60 = vpop.permute.xlu0 %877  ;;  %v1102_v16 = vsub.f32 1.0, %v2043_v4  ;;  %vm2165_vm6 = vmand %vm1206_vm2, %vm2125_vm3 }
  0xc7   : > { %v888_v0 = vpop.permute.xlu1 %887  ;;  %v2046_v7 = vmul.f32 %v2031_v63, %v878_v60 }
  0xc8   : > { %v2057_v17 = vmul.f32 %v2031_v63, %v888_v0  ;;  %v1169_v0 = vadd.s32 24, %v2050_v11 }
  0xc9   : > { %v1101_v21 = vsub.f32 1.0, %v2046_v7 }
  0xca   : > { %v893_v62 = vpop.permute.xlu0 %892  ;;  %v1103_v36 = vsub.f32 1.0, %v2057_v17 }
  0xcb   : > { %v898_v15 = vpop.permute.xlu1 %897  ;;  %v2065_v22 = vmul.f32 %v2031_v63, %v893_v62  ;;  %v2103_v62 = vadd.s32 %v2070_v32, %v2050_v11 }
  0xcc   : > { %v2085_v50 = vmul.f32 %v2031_v63, %v898_v15 }
  0xcd   : > { %v1104_v42 = vsub.f32 1.0, %v2065_v22  ;;  %vm1205_vm4 = vcmp.lt.s32.totalorder %v2103_v62, %v2099_v61 }
  0xce   : > { %v903_v3 = vpop.permute.xlu0 %902  ;;  %vm1256_vm8 = vmand %vm1205_vm4, %vm2125_vm3 }
  0xcf   : > { %v2074_v38 = vmul.f32 %v2031_v63, %v903_v3  ;;  %v908_v53 = vpop.permute.xlu1 %907 }
  0xd0   : > { %v2092_v57 = vmul.f32 %v2031_v63, %v908_v53  ;;  %v2139_v53 = vadd.s32 %v2070_v32, %v1168_v27 }
  0xd1   : > { %v1106_v56 = vsub.f32 1.0, %v2074_v38 }
  0xd2   : > { %v913_v35 = vpop.permute.xlu0 %912  ;;  %vm1207_vm5 = vcmp.lt.s32.totalorder %v2139_v53, %v2099_v61 }
  0xd3   : > { %v2088_v54 = vmul.f32 %v2031_v63, %v913_v35  ;;  %v918_v33 = vpop.permute.xlu1 %917  ;;  %vm1258_vm10 = vmand %vm1207_vm5, %vm2125_vm3 }
 0x153   : > { %v1532_v5 = vpop.f32.mrb[0].mxu0  ;;  %v1544_v6 = vpop.f32.mrb[0].mxu1 }
 0x154   : > { %v732_v8 = vadd.f32 1.0, %v1532_v5  ;;  %v726_v9 = vpop.f32.mrb[1].mxu0  ;;  %v2048_v10 = vpop.f32.mrb[1].mxu1  ;;  %v772_v55 = vadd.f32 1.0, %v1544_v6 }
 0x155   : > { %v727_v12 = vadd.f32 1.0, %v726_v9  ;;  %v767_v9 = vadd.f32 1.0, %v2048_v10  ;;  %v2120_v10 = vadd.s32 %v2070_v32, %v1169_v0 }
 0x156   : > { %v806_v14 = vmul.f32 0.5, %v732_v8 }
 0x157   : > { %v805_v18 = vmul.f32 0.5, %v727_v12  ;;  %v1535_v19 = vpop.f32.mrb[2].mxu0  ;;  %v2061_v20 = vpop.f32.mrb[2].mxu1  ;;  %v1105_v12 = vsub.f32 1.0, %v2085_v50  ;;  %vm1208_vm7 = vcmp.lt.s32.totalorder %v2120_v10, %v2099_v61 }
 0x158   : > { %v822_v23 = vmax.f32 %v806_v14, 0.0  ;;  %v742_v24 = vadd.f32 1.0, %v1535_v19  ;;  %v736_v25 = vpop.f32.mrb[3].mxu0  ;;  %v2067_v26 = vpop.f32.mrb[3].mxu1  ;;  %v1108_v14 = vsub.f32 1.0, %v2088_v54  ;;  %v814_v19 = vmul.f32 0.5, %v772_v55  ;;  %vm2206_vm11 = vmand %vm1208_vm7, %vm2125_vm3 }
 0x159   : > { %v821_v29 = vmax.f32 %v805_v18, 0.0  ;;  %v737_v30 = vadd.f32 1.0, %v736_v25  ;;  %v923_v18 = vpop.permute.xlu0 %922  ;;  %v782_v48 = vadd.f32 1.0, %v2061_v20  ;;  %v2142_v55 = vadd.s32 %v2070_v32, %v1174_v28 }
 0x15a   : > { %v838_v31 = vmin.f32 %v822_v23, 1.0  ;;  %v808_v34 = vmul.f32 0.5, %v742_v24  ;;  %v1107_v23 = vsub.f32 1.0, %v2092_v57  ;;  %v2115_v25 = vmul.f32 %v2031_v63, %v923_v18 }
 0x15b   : > { %v837_v37 = vmin.f32 %v821_v29, 1.0  ;;  %v807_v39 = vmul.f32 0.5, %v737_v30  ;;  %v1538_v40 = vpop.f32.mrb[4].mxu0  ;;  %v2076_v41 = vpop.f32.mrb[4].mxu1  ;;  %vm1213_vm0 = vcmp.lt.s32.totalorder %v2142_v55, %v2099_v61 }
 0x15c   : > { %1649 = vlog2.f32 %v838_v31  ;;  %v1021_v43 = vsub.f32 1.0, %v838_v31  ;;  %v824_v44 = vmax.f32 %v808_v34, 0.0  ;;  %v746_v45 = vpop.f32.mrb[5].mxu0  ;;  %v2079_v46 = vpop.f32.mrb[5].mxu1  ;;  %v752_v58 = vadd.f32 1.0, %v1538_v40 }
 0x15d   : > { %v1020_v49 = vsub.f32 1.0, %v837_v37  ;;  %v823_v52 = vmax.f32 %v807_v39, 0.0  ;;  %v747_v15 = vadd.f32 1.0, %v746_v45  ;;  %v1171_v39 = vadd.s32 40, %v2050_v11 }
 0x15e   : > { %1651 = vlog2.f32 %v1021_v43  ;;  %v840_v51 = vmin.f32 %v824_v44, 1.0  ;;  %v810_v8 = vmul.f32 0.5, %v752_v58  ;;  %v2131_v43 = vmul.f32 %v2031_v63, %v918_v33 }
 0x15f   : > { %v2094_v59 = vpop.f32.mrb[6].mxu0  ;;  %v2096_v60 = vpop.f32.mrb[6].mxu1  ;;  %1653 = vlog2.f32 %v837_v37  ;;  %v839_v6 = vmin.f32 %v823_v52, 1.0  ;;  %v809_v29 = vmul.f32 0.5, %v747_v15  ;;  %v813_v37 = vmul.f32 0.5, %v767_v9 }
 0x160   : > { %v2106_v1 = vpop.f32.mrb[7].mxu0  ;;  %v2108_v3 = vpop.f32.mrb[7].mxu1  ;;  %1655 = vlog2.f32 %v1020_v49  ;;  %v1023_v5 = vsub.f32 1.0, %v840_v51  ;;  %v826_v24 = vmax.f32 %v810_v8, 0.0  ;;  %v830_v45 = vmax.f32 %v814_v19, 0.0 }
 0x161   : > { %1657 = vlog2.f32 %v840_v51  ;;  %v1022_v30 = vsub.f32 1.0, %v839_v6  ;;  %v825_v40 = vmax.f32 %v809_v29, 0.0  ;;  %v1170_v49 = vadd.s32 32, %v2050_v11 }
 0x162   : > { %1659 = vlog2.f32 %v1023_v5  ;;  %v842_v31 = vmin.f32 %v826_v24, 1.0  ;;  %v1110_v51 = vsub.f32 1.0, %v2115_v25  ;;  %v829_v9 = vmax.f32 %v813_v37, 0.0 }
 0x163   : > { %1661 = vlog2.f32 %v839_v6  ;;  %v777_v15 = vadd.f32 1.0, %v2067_v26  ;;  %v2146_v18 = vadd.s32 %v2070_v32, %v1171_v39  ;;  %v841_v19 = vmin.f32 %v825_v40, 1.0 }
 0x164   : > { %1663 = vlog2.f32 %v1022_v30  ;;  %v1025_v5 = vsub.f32 1.0, %v842_v31  ;;  %v846_v24 = vmin.f32 %v830_v45, 1.0  ;;  %v2149_v29 = vadd.s32 %v2070_v32, %v1170_v49 }
 0x165   : > { %v816_v33 = vmul.f32 0.5, %v782_v48  ;;  %1665 = vlog2.f32 %v842_v31  ;;  %v762_v30 = vadd.f32 1.0, %v2094_v59  ;;  %v815_v45 = vmul.f32 0.5, %v777_v15 }
 0x166   : > { %v1650_v34 = vpop.eup %1649  ;;  %1667 = vlog2.f32 %v1025_v5  ;;  %vm1209_vm9 = vcmp.lt.s32.totalorder %v2149_v29, %v2099_v61  ;;  %vm1210_vm12 = vcmp.lt.s32.totalorder %v2146_v18, %v2099_v61 }
 0x167   : > { %v975_v44 = vmul.f32 0.6931472, %v1650_v34  ;;  %1669 = vlog2.f32 %v846_v24  ;;  %vm2231_vm13 = vmand %vm1209_vm9, %vm2125_vm3 }
 0x168   : > { %v1652_v52 = vpop.eup %1651  ;;  %1671 = vlog2.f32 %v841_v19  ;;  %vm1261_vm14 = vmand %vm1210_vm12, %vm2125_vm3 }
 0x169   : > { %v1005_v58 = vmax.f32 %v975_v44, -100.0  ;;  %v1039_v0 = vmul.f32 0.6931472, %v1652_v52  ;;  %v1654_v8 = vpop.eup %1653  ;;  %v845_v44 = vmin.f32 %v829_v9, 1.0  ;;  %v1024_v52 = vsub.f32 1.0, %v841_v19 }
 0x16a   : > { %v1656_v20 = vpop.eup %1655  ;;  %v973_v27 = vmul.f32 0.6931472, %v1654_v8  ;;  %v1029_v8 = vsub.f32 1.0, %v846_v24  ;;  %v792_v9 = vadd.f32 1.0, %v2076_v41  ;;  %v831_v41 = vmax.f32 %v815_v45, 0.0 }
 0x16b   : > { %v1069_v6 = vmax.f32 %v1039_v0, -100.0  ;;  %v1037_v28 = vmul.f32 0.6931472, %v1656_v20  ;;  %v1085_v34 = vmul.f32 %v1005_v58, %v2046_v7  ;;  %v1658_v39 = vpop.eup %1657  ;;  %v832_v7 = vmax.f32 %v816_v33, 0.0 }
 0x16c   : > { %v1004_v37 = vmax.f32 %v973_v27, -100.0  ;;  %v1660_v0 = vpop.eup %1659  ;;  %v979_v48 = vmul.f32 0.6931472, %v1658_v39  ;;  %1673 = vlog2.f32 %v1024_v52  ;;  %v1028_v47 = vsub.f32 1.0, %v845_v44 }
 0x16d   : > { %v1117_v26 = vmul.f32 %v1101_v21, %v1069_v6  ;;  %v1068_v40 = vmax.f32 %v1037_v28, -100.0  ;;  %v1043_v58 = vmul.f32 0.6931472, %v1660_v0  ;;  %v787_v19 = vadd.f32 1.0, %v2079_v46 }
 0x16e   : > { %v1084_v31 = vmul.f32 %v1004_v37, %v2040_v2  ;;  %v812_v2 = vmul.f32 0.5, %v762_v30  ;;  %v1007_v20 = vmax.f32 %v979_v48, -100.0  ;;  %1675 = vlog2.f32 %v1029_v8 }
 0x16f   : > { %v1133_v49 = vadd.f32 %v1117_v26, %v1085_v34  ;;  %v1116_v59 = vmul.f32 %v1100_v13, %v1068_v40  ;;  %v1662_v13 = vpop.eup %1661  ;;  %v1071_v6 = vmax.f32 %v1043_v58, -100.0  ;;  %v848_v26 = vmin.f32 %v832_v7, 1.0 }
 0x170   : > { %v1664_v24 = vpop.eup %1663  ;;  %v977_v27 = vmul.f32 0.6931472, %v1662_v13  ;;  %v818_v39 = vmul.f32 0.5, %v792_v9  ;;  %v1087_v52 = vmul.f32 %v1007_v20, %v2057_v17  ;;  %v828_v45 = vmax.f32 %v812_v2, 0.0 }
 0x171   : > { %v1149_v21 = vsub.f32 0.0, %v1133_v49  ;;  %v1132_v15 = vadd.f32 %v1116_v59, %v1084_v31  ;;  %v1119_v30 = vmul.f32 %v1103_v36, %v1071_v6  ;;  %v1041_v34 = vmul.f32 0.6931472, %v1664_v24  ;;  %v1666_v40 = vpop.eup %1665 }
 0x172   : > { %v1006_v37 = vmax.f32 %v977_v27, -100.0  ;;  %v1668_v49 = vpop.eup %1667  ;;  %v2183_v48 = vmin.f32 %v831_v41, 1.0  ;;  %v983_v31 = vmul.f32 0.6931472, %v1666_v40  ;;  %v817_v59 = vmul.f32 0.5, %v787_v19 }
 0x173   : > { %v1273_v28 = vsel %vm2165_vm6, %v1149_v21, 0.0  ;;  %v1148_v33 = vsub.f32 0.0, %v1132_v15  ;;  %v1070_v0 = vmax.f32 %v1041_v34, -100.0  ;;  %v1135_v58 = vadd.f32 %v1119_v30, %v1087_v52  ;;  %v2188_v21 = vpop.eup %1669  ;;  %v933_v30 = vpop.permute.xlu0 %932 }
 0x174   : > { %v1086_v36 = vmul.f32 %v1006_v37, %v2043_v4  ;;  %v1047_v7 = vmul.f32 0.6931472, %v1668_v49  ;;  %1677 = vlog2.f32 %v845_v44  ;;  %v834_v5 = vmax.f32 %v818_v39, 0.0  ;;  %v1672_v20 = vpop.eup %1671 }
 0x175   : > { %v1272_v62 = vsel %vm1256_vm8, %v1148_v33, 0.0  ;;  %v1118_v8 = vmul.f32 %v1102_v16, %v1070_v0  ;;  %v802_v17 = vadd.f32 1.0, %v2096_v60  ;;  %v1009_v2 = vmax.f32 %v983_v31, -100.0  ;;  %v928_v33 = vpop.permute.xlu1 %927  ;;  %vm1264_vm8 = vmand %vm1213_vm0, %vm2125_vm3 }
 0x176   : > { %v1288_v46 = vadd.f32 %v1273_v28, %v1272_v62  ;;  %v1073_v13 = vmax.f32 %v1047_v7, -100.0  ;;  %v844_v15 = vmin.f32 %v828_v45, 1.0  ;;  %1679 = vlog2.f32 %v1028_v47  ;;  %v1674_v44 = vpop.eup %1673 }
 0x177   : > { %v1134_v9 = vadd.f32 %v1118_v8, %v1086_v36  ;;  %v1031_v6 = vsub.f32 1.0, %v848_v26  ;;  %v1030_v4 = vsub.f32 1.0, %v2183_v48  ;;  %v833_v16 = vmax.f32 %v817_v59, 0.0 }
 0x178   : > { %v1151_v24 = vsub.f32 0.0, %v1135_v58  ;;  %v1121_v60 = vmul.f32 %v1105_v12, %v1073_v13  ;;  %v981_v41 = vmul.f32 0.6931472, %v1672_v20  ;;  %1681 = vlog2.f32 %v848_v26  ;;  %v2213_v40 = vpop.eup %1675 }
 0x179   : > { %v1150_v27 = vsub.f32 0.0, %v1134_v9  ;;  %v2210_v53 = vmin.f32 %v834_v5, 1.0  ;;  %v1045_v19 = vmul.f32 0.6931472, %v1674_v44  ;;  %v1027_v28 = vsub.f32 1.0, %v844_v15  ;;  %v943_v9 = vpop.permute.xlu0 %942 }
 0x17a   : > { %v1089_v12 = vmul.f32 %v1009_v2, %v2085_v50  ;;  %v1008_v37 = vmax.f32 %v981_v41, -100.0  ;;  %v820_v39 = vmul.f32 0.5, %v802_v17  ;;  %1683 = vlog2.f32 %v1031_v6  ;;  %v938_v17 = vpop.permute.xlu1 %937 }
 0x17b   : > { %v1274_v34 = vsel %vm1258_vm10, %v1150_v27, 0.0  ;;  %v1072_v62 = vmax.f32 %v1045_v19, -100.0  ;;  %v849_v52 = vmin.f32 %v833_v16, 1.0  ;;  %v1275_v26 = vsel %vm2206_vm11, %v1151_v24, 0.0 }
 0x17c   : > { %v1289_v10 = vadd.f32 %v1288_v46, %v1274_v34  ;;  %v1137_v0 = vadd.f32 %v1121_v60, %v1089_v12  ;;  %1685 = vlog2.f32 %v1027_v28  ;;  %v757_v45 = vadd.f32 1.0, %v2106_v1 }
 0x17d   : > { %v1088_v49 = vmul.f32 %v1008_v37, %v2065_v22  ;;  %v1120_v50 = vmul.f32 %v1104_v42, %v1072_v62  ;;  %v797_v59 = vadd.f32 1.0, %v2108_v3  ;;  %v1109_v46 = vsub.f32 1.0, %v2131_v43 }
 0x17e   : > { %v1290_v31 = vadd.f32 %v1289_v10, %v1275_v26  ;;  %1687 = vlog2.f32 %v844_v15  ;;  %v811_v58 = vmul.f32 0.5, %v757_v45  ;;  %v1678_v36 = vpop.eup %1677  ;;  %v1033_v8 = vsub.f32 1.0, %v2210_v53  ;;  %v948_v12 = vpop.permute.xlu1 %947 }
 0x17f   : > { %v1136_v7 = vadd.f32 %v1120_v50, %v1088_v49  ;;  %v836_v1 = vmax.f32 %v820_v39, 0.0  ;;  %v819_v5 = vmul.f32 0.5, %v797_v59  ;;  %1689 = vlog2.f32 %v1030_v4 }
 0x180   : > { %v1175_v42 = vadd.s32 72, %v2050_v11  ;;  %v1176_v3 = vadd.s32 80, %v2050_v11  ;;  %v827_v2 = vmax.f32 %v811_v58, 0.0  ;;  %v1680_v13 = vpop.eup %1679  ;;  %v1153_v15 = vsub.f32 0.0, %v1137_v0 }
 0x181   : > { %v1152_v20 = vsub.f32 0.0, %v1136_v7  ;;  %v1032_v6 = vsub.f32 1.0, %v849_v52  ;;  %v835_v16 = vmax.f32 %v819_v5, 0.0  ;;  %1691 = vlog2.f32 %v2183_v48 }
 0x182   : > { %v843_v29 = vmin.f32 %v827_v2, 1.0  ;;  %v2244_v4 = vmul.f32 %v2031_v63, %v933_v30  ;;  %v2247_v44 = vmul.f32 %v2031_v63, %v943_v9  ;;  %v2249_v24 = vpop.eup %1681  ;;  %1693 = vlog2.f32 %v1033_v8 }
 0x183   : > { %v1276_v27 = vsel %vm2231_vm13, %v1152_v20, 0.0  ;;  %v852_v48 = vmin.f32 %v836_v1, 1.0  ;;  %v851_v60 = vmin.f32 %v835_v16, 1.0  ;;  %v2254_v18 = vmul.f32 %v2031_v63, %v928_v33 }
 0x184   : > { %v1291_v41 = vadd.f32 %v1290_v31, %v1276_v27  ;;  %1695 = vlog2.f32 %v843_v29  ;;  %v1026_v47 = vsub.f32 1.0, %v843_v29  ;;  %v1684_v19 = vpop.eup %1683  ;;  %v1277_v28 = vsel %vm1261_vm14, %v1153_v15, 0.0 }
 0x185   : > { %1697 = vlog2.f32 %v1032_v6  ;;  %v2257_v30 = vadd.s32 %v2070_v32, %v1175_v42  ;;  %v2260_v34 = vadd.s32 %v2070_v32, %v1176_v3  ;;  %v1173_v39 = vadd.s32 56, %v2050_v11 }
 0x186   : > { %v1686_v37 = vpop.eup %1685  ;;  %1699 = vlog2.f32 %v1026_v47  ;;  %v2263_v10 = vadd.f32 %v1291_v41, %v1277_v28  ;;  %v1034_v62 = vsub.f32 1.0, %v851_v60  ;;  %v1035_v33 = vsub.f32 1.0, %v852_v48 }
 0x187   : > { %1701 = vlog2.f32 %v849_v52  ;;  %v1112_v26 = vsub.f32 1.0, %v2244_v4  ;;  %v1114_v0 = vsub.f32 1.0, %v2247_v44  ;;  %v1177_v49 = vadd.s32 88, %v2050_v11 }
 0x188   : > { %v1688_v45 = vpop.eup %1687  ;;  %v1111_v50 = vsub.f32 1.0, %v2254_v18  ;;  %v2270_v31 = vmul.f32 %v2031_v63, %v938_v17  ;;  %v2273_v59 = vmul.f32 %v2031_v63, %v948_v12  ;;  %v989_v58 = vmul.f32 0.6931472, %v1678_v36 }
 0x189   : > { %1703 = vlog2.f32 %v2210_v53  ;;  %v1051_v52 = vmul.f32 0.6931472, %v1686_v37  ;;  %v1179_v8 = vadd.s32 104, %v2050_v11  ;;  %v1690_v7 = vpop.eup %1689  ;;  %v1053_v1 = vmul.f32 0.6931472, %v1680_v13 }
 0x18a   : > { %v2278_v5 = vadd.s32 %v2070_v32, %v1173_v39  ;;  %1705 = vlog2.f32 %v1034_v62  ;;  %v1178_v9 = vadd.s32 96, %v2050_v11  ;;  %v991_v17 = vmul.f32 0.6931472, %v2188_v21 }
 0x18b   : > { %v1055_v22 = vmul.f32 0.6931472, %v2213_v40  ;;  %v987_v63 = vmul.f32 0.6931472, %v1688_v45  ;;  %1707 = vlog2.f32 %v1035_v33  ;;  %v1692_v36 = vpop.eup %1691  ;;  %v1172_v53 = vadd.s32 48, %v2050_v11 }
 0x18c   : > { %1709 = vlog2.f32 %v851_v60  ;;  %v1113_v42 = vsub.f32 1.0, %v2270_v31  ;;  %v1115_v3 = vsub.f32 1.0, %v2273_v59  ;;  %v1694_v2 = vpop.eup %1693  ;;  %v1012_v13 = vmax.f32 %v989_v58, -100.0 }
 0x18d   : > { %v1075_v15 = vmax.f32 %v1051_v52, -100.0  ;;  %v2287_v20 = vadd.s32 %v2070_v32, %v1177_v49  ;;  %v2290_v21 = vadd.s32 %v2070_v32, %v1179_v8  ;;  %v1076_v6 = vmax.f32 %v1053_v1, -100.0 }
 0x18e   : > { %v1696_v40 = vpop.eup %1695  ;;  %v1057_v16 = vmul.f32 0.6931472, %v1690_v7  ;;  %1711 = vlog2.f32 %v852_v48  ;;  %v2293_v29 = vadd.s32 %v2070_v32, %v1178_v9  ;;  %v1013_v60 = vmax.f32 %v991_v17, -100.0 }
 0x18f   : > { %v1698_v27 = vpop.eup %1697  ;;  %v1077_v41 = vmax.f32 %v1055_v22, -100.0  ;;  %v1011_v47 = vmax.f32 %v987_v63, -100.0  ;;  %vm1212_vm15 = vcmp.lt.s32.totalorder %v2278_v5, %v2099_v61  ;;  %v985_v28 = vmul.f32 0.6931472, %v1696_v40 }
 0x190   : > { %v1700_v12 = vpop.eup %1699  ;;  %v993_v37 = vmul.f32 0.6931472, %v1692_v36  ;;  %v1189_v39 = vadd.s32 %v2070_v32, %v1172_v53  ;;  %v1059_v62 = vmul.f32 0.6931472, %v1684_v19  ;;  %v2301_v48 = vadd.s32 112, %v2050_v11  ;;  %vm1263_vm7 = vmand %vm1212_vm15, %vm2125_vm3 }
 0x191   : > { %v1702_v33 = vpop.eup %1701  ;;  %v1092_v45 = vmul.f32 %v1012_v13, %v2088_v54  ;;  %v1123_v49 = vmul.f32 %v1107_v23, %v1075_v15  ;;  %v1010_v58 = vmax.f32 %v985_v28, -100.0  ;;  %v1049_v52 = vmul.f32 0.6931472, %v1700_v12 }
 0x192   : > { %v1124_v8 = vmul.f32 %v1108_v14, %v1076_v6  ;;  %vm1214_vm1 = vcmp.lt.s32.totalorder %v2257_v30, %v2099_v61  ;;  %v1078_v7 = vmax.f32 %v1057_v16, -100.0  ;;  %v995_v19 = vmul.f32 0.6931472, %v2249_v24 }
 0x193   : > { %v1061_v1 = vmul.f32 0.6931472, %v1698_v27  ;;  %v1704_v9 = vpop.eup %1703  ;;  %v1093_v17 = vmul.f32 %v1013_v60, %v2131_v43  ;;  %v1125_v22 = vmul.f32 %v1109_v46, %v1077_v41  ;;  %v1091_v23 = vmul.f32 %v1011_v47, %v2092_v57  ;;  %vm1265_vm9 = vmand %vm1214_vm1, %vm2125_vm3 }
 0x194   : > { %v1074_v63 = vmax.f32 %v1049_v52, -100.0  ;;  %v1706_v36 = vpop.eup %1705  ;;  %v1014_v53 = vmax.f32 %v993_v37, -100.0  ;;  %v1079_v54 = vmax.f32 %v1059_v62, -100.0  ;;  %v997_v14 = vmul.f32 0.6931472, %v1702_v33 }
 0x195   : > { %v1063_v13 = vmul.f32 0.6931472, %v1694_v2  ;;  %v1708_v15 = vpop.eup %1707  ;;  %vm1215_vm2 = vcmp.lt.s32.totalorder %v2260_v34, %v2099_v61  ;;  %v1139_v24 = vadd.f32 %v1123_v49, %v1091_v23  ;;  %v1090_v40 = vmul.f32 %v1010_v58, %v2074_v38 }
 0x196   : > { %v1122_v6 = vmul.f32 %v1106_v56, %v1074_v63  ;;  %vm1211_vm4 = vcmp.lt.s32.totalorder %v1189_v39, %v2099_v61  ;;  %v1710_v43 = vpop.eup %1709  ;;  %v1140_v57 = vadd.f32 %v1124_v8, %v1092_v45  ;;  %v1126_v46 = vmul.f32 %v1110_v51, %v1078_v7  ;;  %vm1266_vm10 = vmand %vm1215_vm2, %vm2125_vm3 }
 0x197   : > { %v1015_v16 = vmax.f32 %v995_v19, -100.0  ;;  %v1080_v27 = vmax.f32 %v1061_v1, -100.0  ;;  %v1141_v2 = vadd.f32 %v1125_v22, %v1093_v17  ;;  %v1065_v41 = vmul.f32 0.6931472, %v1706_v36  ;;  %vm1262_vm6 = vmand %vm1211_vm4, %vm2125_vm3 }
 0x198   : > { %v1138_v60 = vadd.f32 %v1122_v6, %v1090_v40  ;;  %vm1216_vm5 = vcmp.lt.s32.totalorder %v2287_v20, %v2099_v61  ;;  %v999_v47 = vmul.f32 0.6931472, %v1704_v9  ;;  %v1712_v28 = vpop.eup %1711  ;;  %v1094_v38 = vmul.f32 %v1014_v53, %v2115_v25 }
 0x199   : > { %v1127_v56 = vmul.f32 %v1111_v50, %v1079_v54  ;;  %v1016_v12 = vmax.f32 %v997_v14, -100.0  ;;  %v1081_v51 = vmax.f32 %v1063_v13, -100.0  ;;  %v1155_v37 = vsub.f32 0.0, %v1139_v24  ;;  %vm1267_vm12 = vmand %vm1216_vm5, %vm2125_vm3 }
 0x19a   : > { %v1154_v39 = vsub.f32 0.0, %v1138_v60  ;;  %v1001_v62 = vmul.f32 0.6931472, %v1710_v43  ;;  %v1067_v33 = vmul.f32 0.6931472, %v1708_v15  ;;  %v1156_v45 = vsub.f32 0.0, %v1140_v57 }
 0x19b   : > { %v1142_v49 = vadd.f32 %v1126_v46, %v1094_v38  ;;  %v1095_v25 = vmul.f32 %v1015_v16, %v2254_v18  ;;  %v1128_v58 = vmul.f32 %v1112_v26, %v1080_v27  ;;  %v1017_v52 = vmax.f32 %v999_v47, -100.0 }
 0x19c   : > { %v1278_v50 = vsel %vm1262_vm6, %v1154_v39, 0.0  ;;  %v1082_v8 = vmax.f32 %v1065_v41, -100.0  ;;  %v1003_v7 = vmul.f32 0.6931472, %v1712_v28  ;;  %v1157_v19 = vsub.f32 0.0, %v1141_v2  ;;  %v1303_v28 = vld [vmem:[%s1867_s9] sm:$0xff] }
 0x19d   : > { %v1293_v1 = vadd.f32 %v2263_v10, %v1278_v50  ;;  %v1143_v5 = vadd.f32 %v1127_v56, %v1095_v25  ;;  %v1096_v9 = vmul.f32 %v1016_v12, %v2244_v4  ;;  %v1279_v18 = vsel %vm1263_vm7, %v1155_v37, 0.0 }
 0x19e   : > { %v1129_v55 = vmul.f32 %v1113_v42, %v1081_v51  ;;  %v1018_v26 = vmax.f32 %v1001_v62, -100.0  ;;  %v1083_v17 = vmax.f32 %v1067_v33, -100.0  ;;  %v1280_v22 = vsel %vm1264_vm8, %v1156_v45, 0.0 }
 0x19f   : > { %v1158_v23 = vsub.f32 0.0, %v1142_v49  ;;  %v1294_v63 = vadd.f32 %v1293_v1, %v1279_v18  ;;  %v1181_v10 = vadd.s32 120, %v2050_v11  ;;  %v1144_v36 = vadd.f32 %v1128_v58, %v1096_v9 }
 0x1a0   : > { %v1097_v4 = vmul.f32 %v1017_v52, %v2270_v31  ;;  %v1130_v53 = vmul.f32 %v1114_v0, %v1082_v8  ;;  %v1019_v54 = vmax.f32 %v1003_v7, -100.0  ;;  %v1281_v30 = vsel %vm1265_vm9, %v1157_v19, 0.0 }
 0x1a1   : > { %v1295_v42 = vadd.f32 %v1294_v63, %v1280_v22  ;;  %vm1217_vm11 = vcmp.lt.s32.totalorder %v2293_v29, %v2099_v61  ;;  %v1197_v11 = vadd.s32 %v2070_v32, %v2301_v48  ;;  %v1159_v14 = vsub.f32 0.0, %v1143_v5 }
 0x1a2   : > { %v1145_v31 = vadd.f32 %v1129_v55, %v1097_v4  ;;  %v1098_v13 = vmul.f32 %v1018_v26, %v2247_v44  ;;  %v1131_v0 = vmul.f32 %v1115_v3, %v1083_v17  ;;  %vm1218_vm13 = vcmp.lt.s32.totalorder %v2290_v21, %v2099_v61  ;;  %vm1268_vm14 = vmand %vm1217_vm11, %vm2125_vm3 }
 0x1a3   : > { %v1296_v34 = vadd.f32 %v1295_v42, %v1281_v30  ;;  %v1198_v15 = vadd.s32 %v2070_v32, %v1181_v10  ;;  %v1282_v48 = vsel %vm1266_vm10, %v1158_v23, 0.0  ;;  %v1160_v24 = vsub.f32 0.0, %v1144_v36  ;;  %vm1269_vm0 = vmand %vm1218_vm13, %vm2125_vm3 }
 0x1a4   : > { %v1146_v40 = vadd.f32 %v1130_v53, %v1098_v13  ;;  %v1099_v44 = vmul.f32 %v1019_v54, %v2273_v59  ;;  %v1283_v3 = vsel %vm1267_vm12, %v1159_v14, 0.0  ;;  %v1161_v20 = vsub.f32 0.0, %v1145_v31 }
 0x1a5   : > { %v1297_v6 = vadd.f32 %v1296_v34, %v1282_v48  ;;  %vm1219_vm15 = vcmp.lt.s32.totalorder %v1197_v11, %v2099_v61  ;;  %v1284_v32 = vsel %vm1268_vm14, %v1160_v24, 0.0  ;;  %vm1220_vm1 = vcmp.lt.s32.totalorder %v1198_v15, %v2099_v61 }
 0x1a6   : > { %v1147_v21 = vadd.f32 %v1131_v0, %v1099_v44  ;;  %v1162_v57 = vsub.f32 0.0, %v1146_v40  ;;  %vm1270_vm2 = vmand %vm1219_vm15, %vm2125_vm3  ;;  %v1285_v29 = vsel %vm1269_vm0, %v1161_v20, 0.0  ;;  %v1305_v60 = vstv %s1304_s0 }
 0x1a7   : > { %v1298_v43 = vadd.f32 %v1297_v6, %v1283_v3  ;;  %vm1271_vm4 = vmand %vm1220_vm1, %vm2125_vm3 }
 0x1a8   : > { %v1163_v46 = vsub.f32 0.0, %v1147_v21  ;;  %v1286_v27 = vsel %vm1270_vm2, %v1162_v57, 0.0 }
 0x1a9   : > { %v1299_v59 = vadd.f32 %v1298_v43, %v1284_v32 }
 0x1aa   : > { %v1287_v41 = vsel %vm1271_vm4, %v1163_v46, 0.0 }
 0x1ab   : > { %v1300_v16 = vadd.f32 %v1299_v59, %v1285_v29 }
 0x1ad   : > { %v1301_v2 = vadd.f32 %v1300_v16, %v1286_v27 }
 0x1af   : > { %v1302_v47 = vadd.f32 %v1301_v2, %v1287_v41 }
 0x1b1   : > { %v1306_v38 = vmul.f32 %v1305_v60, %v1302_v47 }
 0x1b3   : > { %v1307_v61 = vadd.f32 %v1306_v38, %v1303_v28 }
 0x1b5   : > { %1308 = vst [vmem:[%s1867_s9] sm:$0xff] %v1307_v61 }
 0x1b6 PF: > { %s33_s21 = sadd.s32 1, %s1773_s21   ;;  %s2421_s20 = smov %s1769_s2 }
 0x1b7   : > { %p30_p11 = scmp.ge.s32.totalorder %s33_s21, 4   ;;  %s2422_s2 = smov %s2424_s3 }
 0x1b9   :  { %32 = sbr.rel (!%p30_p11) target bundleno = 38 (0x26), region = 83 }

</bundles_post_ra>
